<compile_context>
chip_gen: v5e
topology: v5e:2x2
jax: 0.10.0
libtpu: 0.0.40
codegen_flags: <defaults>
</compile_context>

<pallas_src>
import jax
import jax.numpy as jnp
from jax.experimental import pallas as pl
from jax.experimental.pallas import tpu as pltpu  # noqa: F401  (TPU backend)

_LANE = 128  # lane-dense width for the confidence output slab


def _explainable_kernel(h_ref, rec_ref,
                        fw1_ref, fb1_ref, fw2_ref, fb2_ref,
                        w1lh_ref, w1rec_ref, b1_ref,
                        wj2_ref, bj2_ref,
                        wc2_ref, bc2_ref,
                        fi_ref, just_ref, conf_ref):
    B, S, D = h_ref.shape
    BN = rec_ref.shape[0]
    n_per_b = BN // B

    last_hidden = h_ref[:, S - 1, :]                                   # (B, D)

    # ---- feature importance: Linear -> ReLU -> Linear -> Softmax ----
    hf = jnp.dot(last_hidden, fw1_ref[...],
                 preferred_element_type=jnp.float32) + fb1_ref[...]
    hf = jnp.maximum(hf, 0.0)
    logits = jnp.dot(hf, fw2_ref[...],
                     preferred_element_type=jnp.float32) + fb2_ref[...]
    m = jnp.max(logits, axis=-1, keepdims=True)
    e = jnp.exp(logits - m)
    denom = jnp.sum(e, axis=-1, keepdims=True)
    fi_ref[...] = e * pl.reciprocal(denom, approx=True)

    # ---- fused first layer of justification + confidence heads ----
    # combined @ [Wj1 | Wc1] = last_hidden @ W1[:D] + rec @ W1[D:]
    lh_term = jnp.dot(last_hidden, w1lh_ref[...],
                      preferred_element_type=jnp.float32) + b1_ref[...]  # (B, D+Dh)
    rec_term = jnp.dot(rec_ref[...], w1rec_ref[...],
                       preferred_element_type=jnp.float32)               # (BN, D+Dh)

    # One-hot (row -> batch) selection broadcasts lh_term over the N
    # recommendation rows of each batch (rows are b-major, (i,j)-minor).
    row_ids = jax.lax.broadcasted_iota(jnp.int32, (BN, B), 0)
    col_ids = jax.lax.broadcasted_iota(jnp.int32, (BN, B), 1)
    lo = col_ids * n_per_b
    sel = jnp.logical_and(row_ids >= lo, row_ids < lo + n_per_b).astype(jnp.float32)
    h1 = rec_term + jnp.dot(sel, lh_term, preferred_element_type=jnp.float32)
    h1 = jnp.maximum(h1, 0.0)                                            # (BN, D+Dh)

    hj = h1[:, :D]                                                       # (BN, D)
    hc = h1[:, D:]                                                       # (BN, Dh)

    # justification: Linear(D, 512) -> Tanh  (Dropout = identity, eval mode)
    just_ref[...] = jnp.tanh(
        jnp.dot(hj, wj2_ref[...], preferred_element_type=jnp.float32) + bj2_ref[...])

    # confidence: Linear(Dh, 1) -> Sigmoid as VPU multiply + lane reduce,
    # stored lane-dense (column 0 sliced in the wrapper).
    c_logit = jnp.sum(hc * wc2_ref[...], axis=-1, keepdims=True) + bc2_ref[...]  # (BN, 1)
    conf = jax.nn.sigmoid(c_logit)
    conf_ref[...] = jnp.broadcast_to(conf, conf_ref.shape)


def _full_spec(shape):
    # whole-array block (no grid): no (8,128) block constraints triggered
    ndim = len(shape)
    return pl.BlockSpec(shape, lambda *_: (0,) * ndim)


def explainable_ai_forward(hidden_states, recommendations, params):
    B, S, D = hidden_states.shape
    _, I, J, R = recommendations.shape
    N = I * J
    BN = B * N
    Dh = D // 2

    # rows ordered b-major, then i-major/j-minor — matches PyTorch loop order.
    rec2d = recommendations.reshape(BN, R)

    # Pack the two first-layer weights column-wise (one MXU push), then split
    # rows into the last_hidden part and the recommendation part.
    w1 = jnp.concatenate([params["j_w1"], params["c_w1"]], axis=1)   # (D+R, D+Dh)
    b1 = jnp.concatenate([params["j_b1"], params["c_b1"]], axis=1)   # (1, D+Dh)
    w1_lh = w1[:D, :]                                                # (D, D+Dh)
    w1_rec = w1[D:, :]                                               # (R, D+Dh)
    wc2_row = params["c_w2"].T                                       # (1, Dh)

    fi, just2d, conf_pad = pl.pallas_call(
        _explainable_kernel,
        out_shape=(
            jax.ShapeDtypeStruct((B, D), jnp.float32),
            jax.ShapeDtypeStruct((BN, 512), jnp.float32),
            jax.ShapeDtypeStruct((BN, _LANE), jnp.float32),
        ),
        in_specs=[
            _full_spec((B, S, D)),
            _full_spec((BN, R)),
            _full_spec((D, D)), _full_spec((1, D)),
            _full_spec((D, D)), _full_spec((1, D)),
            _full_spec((D, D + Dh)), _full_spec((R, D + Dh)), _full_spec((1, D + Dh)),
            _full_spec((D, 512)), _full_spec((1, 512)),
            _full_spec((1, Dh)), _full_spec((1, 1)),
        ],
        out_specs=(
            _full_spec((B, D)),
            _full_spec((BN, 512)),
            _full_spec((BN, _LANE)),
        ),
    )(hidden_states, rec2d,
      params["fi_w1"], params["fi_b1"], params["fi_w2"], params["fi_b2"],
      w1_lh, w1_rec, b1,
      params["j_w2"], params["j_b2"],
      wc2_row, params["c_b2"])

    return {
        "feature_importance": fi,
        "justifications": just2d.reshape(B, N, 512),
        "confidence_scores": conf_pad[:, :1].reshape(B, N, 1),
    }


def _reference_forward(hidden_states, recommendations, params):
    """Pure-JAX reference mirroring the PyTorch module (eval mode)."""
    _, I, J, _ = recommendations.shape
    lh = hidden_states[:, -1, :]
    h = jnp.maximum(lh @ params["fi_w1"] + params["fi_b1"], 0.0)
    fi = jax.nn.softmax(h @ params["fi_w2"] + params["fi_b2"], axis=-1)
    justs, confs = [], []
    for i in range(I):
        for j in range(J):
            rec = recommendations[:, i, j, :]
            c = jnp.concatenate([lh, rec], axis=-1)
            hj = jnp.maximum(c @ params["j_w1"] + params["j_b1"], 0.0)
            justs.append(jnp.tanh(hj @ params["j_w2"] + params["j_b2"]))
            hc = jnp.maximum(c @ params["c_w1"] + params["c_b1"], 0.0)
            confs.append(jax.nn.sigmoid(hc @ params["c_w2"] + params["c_b2"]))
    return {
        "feature_importance": fi,
        "justifications": jnp.stack(justs, axis=1),
        "confidence_scores": jnp.stack(confs, axis=1),
    }


def init_params(key, d_model, rec_dim):
    """Deterministic synthetic parameters (weights stored as (in, out))."""
    ks = jax.random.split(key, 16)
    Dh = d_model // 2

    def w(k, shape, scale):
        return (scale * jax.random.normal(k, shape)).astype(jnp.float32)

    return {
        # feature_importance: Linear(D,D), Linear(D,D)
        "fi_w1": w(ks[0], (d_model, d_model), 0.05),
        "fi_b1": w(ks[1], (1, d_model), 0.05),
        "fi_w2": w(ks[2], (d_model, d_model), 0.05),
        "fi_b2": w(ks[3], (1, d_model), 0.05),
        # justification_generator: Linear(D+R, D), Linear(D, 512)
        "j_w1": w(ks[4], (d_model + rec_dim, d_model), 0.05),
        "j_b1": w(ks[5], (1, d_model), 0.05),
        "j_w2": w(ks[6], (d_model, 512), 0.05),
        "j_b2": w(ks[7], (1, 512), 0.05),
        # confidence_estimator: Linear(D+R, D//2), Linear(D//2, 1)
        "c_w1": w(ks[8], (d_model + rec_dim, Dh), 0.05),
        "c_b1": w(ks[9], (1, Dh), 0.05),
        "c_w2": w(ks[10], (Dh, 1), 0.05),
        "c_b2": w(ks[11], (1, 1), 0.05),
    }


if __name__ == "__main__":
    B, S, D = 2, 8, 32          # batch, seq, d_model
    I, J, R = 2, 2, 16          # recommendation grid and recommendation_dim

    key = jax.random.PRNGKey(0)
    k_h, k_r, k_p = jax.random.split(key, 3)

    hidden_states = jax.random.normal(k_h, (B, S, D), dtype=jnp.float32)
    recommendations = jax.random.normal(k_r, (B, I, J, R), dtype=jnp.float32)
    params = init_params(k_p, D, R)

    fwd = jax.jit(explainable_ai_forward)
    out = fwd(hidden_states, recommendations, params)
    out = jax.tree_util.tree_map(jax.block_until_ready, out)

    # shape checks
    assert out["feature_importance"].shape == (B, D)
    assert out["justifications"].shape == (B, I * J, 512)
    assert out["confidence_scores"].shape == (B, I * J, 1)

    # basic semantic checks (tolerances account for approx reciprocal / EUP)
    assert bool(jnp.allclose(jnp.sum(out["feature_importance"], axis=-1), 1.0, atol=1e-2))
    assert bool(jnp.all((out["confidence_scores"] >= 0.0) & (out["confidence_scores"] <= 1.0)))
    assert bool(jnp.all(jnp.abs(out["justifications"]) <= 1.0))

    # numerical check against the pure-JAX reference of the PyTorch module
    ref = _reference_forward(hidden_states, recommendations, params)
    for name in ("feature_importance", "justifications", "confidence_scores"):
        assert bool(jnp.allclose(out[name], ref[name], atol=2e-2, rtol=2e-2)), name

    print("KERNEL_OK")
</pallas_src>

<mosaic_0001>
module attributes {stable_mosaic.version = 11 : i64} {
  func.func @_explainable_kernel(%arg0: memref<2x8x32xf32, #tpu.memory_space<vmem>>, %arg1: memref<8x16xf32, #tpu.memory_space<vmem>>, %arg2: memref<32x32xf32, #tpu.memory_space<vmem>>, %arg3: memref<1x32xf32, #tpu.memory_space<vmem>>, %arg4: memref<32x32xf32, #tpu.memory_space<vmem>>, %arg5: memref<1x32xf32, #tpu.memory_space<vmem>>, %arg6: memref<32x48xf32, #tpu.memory_space<vmem>>, %arg7: memref<16x48xf32, #tpu.memory_space<vmem>>, %arg8: memref<1x48xf32, #tpu.memory_space<vmem>>, %arg9: memref<32x512xf32, #tpu.memory_space<vmem>>, %arg10: memref<1x512xf32, #tpu.memory_space<vmem>>, %arg11: memref<1x16xf32, #tpu.memory_space<vmem>>, %arg12: memref<1x1xf32, #tpu.memory_space<vmem>>, %arg13: memref<2x32xf32, #tpu.memory_space<vmem>>, %arg14: memref<8x512xf32, #tpu.memory_space<vmem>>, %arg15: memref<8x128xf32, #tpu.memory_space<vmem>>) attributes {dimension_semantics = [], scalar_prefetch = 0 : i64, scratch_operands = 0 : i64, tpu.core_type = #tpu.core_type<tc>} {
    %c0 = arith.constant 0 : index
    %c7 = arith.constant 7 : index
    %c0_0 = arith.constant 0 : index
    %0 = vector.load %arg0[%c0, %c7, %c0_0] : memref<2x8x32xf32, #tpu.memory_space<vmem>>, vector<2x1x32xf32>
    %1 = vector.shape_cast %0 : vector<2x1x32xf32> to vector<2x32xf32>
    %c0_1 = arith.constant 0 : index
    %c0_2 = arith.constant 0 : index
    %2 = vector.load %arg2[%c0_1, %c0_2] : memref<32x32xf32, #tpu.memory_space<vmem>>, vector<32x32xf32>
    %cst = arith.constant dense<0.000000e+00> : vector<2x32xf32>
    %3 = tpu.matmul %1, %2, %cst {dimension_numbers = #tpu.dot_dimension_numbers<[1], [0], [0], [1], [0, 0, 1, 1], [], []>} : vector<2x32xf32>, vector<32x32xf32>, vector<2x32xf32> -> vector<2x32xf32>
    %c0_3 = arith.constant 0 : index
    %c0_4 = arith.constant 0 : index
    %4 = vector.load %arg3[%c0_3, %c0_4] : memref<1x32xf32, #tpu.memory_space<vmem>>, vector<1x32xf32>
    %5 = vector.broadcast %4 : vector<1x32xf32> to vector<2x32xf32>
    %6 = arith.addf %3, %5 : vector<2x32xf32>
    %cst_5 = arith.constant 0.000000e+00 : f32
    %7 = vector.broadcast %cst_5 : f32 to vector<2x32xf32>
    %8 = arith.maximumf %6, %7 : vector<2x32xf32>
    %c0_6 = arith.constant 0 : index
    %c0_7 = arith.constant 0 : index
    %9 = vector.load %arg4[%c0_6, %c0_7] : memref<32x32xf32, #tpu.memory_space<vmem>>, vector<32x32xf32>
    %cst_8 = arith.constant dense<0.000000e+00> : vector<2x32xf32>
    %10 = tpu.matmul %8, %9, %cst_8 {dimension_numbers = #tpu.dot_dimension_numbers<[1], [0], [0], [1], [0, 0, 1, 1], [], []>} : vector<2x32xf32>, vector<32x32xf32>, vector<2x32xf32> -> vector<2x32xf32>
    %c0_9 = arith.constant 0 : index
    %c0_10 = arith.constant 0 : index
    %11 = vector.load %arg5[%c0_9, %c0_10] : memref<1x32xf32, #tpu.memory_space<vmem>>, vector<1x32xf32>
    %12 = vector.broadcast %11 : vector<1x32xf32> to vector<2x32xf32>
    %13 = arith.addf %10, %12 : vector<2x32xf32>
    %cst_11 = arith.constant dense<0xFF800000> : vector<2xf32>
    %14 = vector.multi_reduction <maximumf>, %13, %cst_11 [1] : vector<2x32xf32> to vector<2xf32>
    %15 = vector.shape_cast %14 : vector<2xf32> to vector<2x1xf32>
    %16 = vector.broadcast %15 : vector<2x1xf32> to vector<2x32xf32>
    %17 = arith.subf %13, %16 : vector<2x32xf32>
    %18 = math.exp %17 : vector<2x32xf32>
    %cst_12 = arith.constant dense<0.000000e+00> : vector<2xf32>
    %19 = vector.multi_reduction <add>, %18, %cst_12 [1] : vector<2x32xf32> to vector<2xf32>
    %20 = vector.shape_cast %19 : vector<2xf32> to vector<2x1xf32>
    %21 = tpu.reciprocal %20 {approx = true} : vector<2x1xf32> -> vector<2x1xf32>
    %22 = vector.broadcast %21 : vector<2x1xf32> to vector<2x32xf32>
    %23 = arith.mulf %18, %22 : vector<2x32xf32>
    %c0_13 = arith.constant 0 : index
    %c0_14 = arith.constant 0 : index
    %24 = vector.load %arg13[%c0_13, %c0_14] : memref<2x32xf32, #tpu.memory_space<vmem>>, vector<2x32xf32>
    tpu.vector_store %arg13[%c0_13, %c0_14], %23 {strides = array<i32>} : memref<2x32xf32, #tpu.memory_space<vmem>>, vector<2x32xf32>,
    %c0_15 = arith.constant 0 : index
    %c0_16 = arith.constant 0 : index
    %25 = vector.load %arg6[%c0_15, %c0_16] : memref<32x48xf32, #tpu.memory_space<vmem>>, vector<32x48xf32>
    %cst_17 = arith.constant dense<0.000000e+00> : vector<2x48xf32>
    %26 = tpu.matmul %1, %25, %cst_17 {dimension_numbers = #tpu.dot_dimension_numbers<[1], [0], [0], [1], [0, 0, 1, 1], [], []>} : vector<2x32xf32>, vector<32x48xf32>, vector<2x48xf32> -> vector<2x48xf32>
    %c0_18 = arith.constant 0 : index
    %c0_19 = arith.constant 0 : index
    %27 = vector.load %arg8[%c0_18, %c0_19] : memref<1x48xf32, #tpu.memory_space<vmem>>, vector<1x48xf32>
    %28 = vector.broadcast %27 : vector<1x48xf32> to vector<2x48xf32>
    %29 = arith.addf %26, %28 : vector<2x48xf32>
    %c0_20 = arith.constant 0 : index
    %c0_21 = arith.constant 0 : index
    %30 = vector.load %arg1[%c0_20, %c0_21] : memref<8x16xf32, #tpu.memory_space<vmem>>, vector<8x16xf32>
    %c0_22 = arith.constant 0 : index
    %c0_23 = arith.constant 0 : index
    %31 = vector.load %arg7[%c0_22, %c0_23] : memref<16x48xf32, #tpu.memory_space<vmem>>, vector<16x48xf32>
    %cst_24 = arith.constant dense<0.000000e+00> : vector<8x48xf32>
    %32 = tpu.matmul %30, %31, %cst_24 {dimension_numbers = #tpu.dot_dimension_numbers<[1], [0], [0], [1], [0, 0, 1, 1], [], []>} : vector<8x16xf32>, vector<16x48xf32>, vector<8x48xf32> -> vector<8x48xf32>
    %33 = tpu.iota {dimensions = array<i32: 0>} : vector<8x2xi32>
    %34 = tpu.iota {dimensions = array<i32: 1>} : vector<8x2xi32>
    %c4_i32 = arith.constant 4 : i32
    %35 = vector.broadcast %c4_i32 : i32 to vector<8x2xi32>
    %36 = arith.muli %34, %35 : vector<8x2xi32>
    %37 = arith.cmpi sge, %33, %36 : vector<8x2xi32>
    %c4_i32_25 = arith.constant 4 : i32
    %38 = vector.broadcast %c4_i32_25 : i32 to vector<8x2xi32>
    %39 = arith.addi %36, %38 : vector<8x2xi32>
    %40 = arith.cmpi slt, %33, %39 : vector<8x2xi32>
    %41 = arith.andi %37, %40 : vector<8x2xi1>
    %42 = arith.extui %41 : vector<8x2xi1> to vector<8x2xi32>
    %43 = arith.sitofp %42 : vector<8x2xi32> to vector<8x2xf32>
    %cst_26 = arith.constant dense<0.000000e+00> : vector<8x48xf32>
    %44 = tpu.matmul %43, %29, %cst_26 {dimension_numbers = #tpu.dot_dimension_numbers<[1], [0], [0], [1], [0, 0, 1, 1], [], []>} : vector<8x2xf32>, vector<2x48xf32>, vector<8x48xf32> -> vector<8x48xf32>
    %45 = arith.addf %32, %44 : vector<8x48xf32>
    %cst_27 = arith.constant 0.000000e+00 : f32
    %46 = vector.broadcast %cst_27 : f32 to vector<8x48xf32>
    %47 = arith.maximumf %45, %46 : vector<8x48xf32>
    %48 = vector.extract_strided_slice %47 {offsets = [0, 0], sizes = [8, 32], strides = [1, 1]} : vector<8x48xf32> to vector<8x32xf32>
    %49 = vector.extract_strided_slice %47 {offsets = [0, 32], sizes = [8, 16], strides = [1, 1]} : vector<8x48xf32> to vector<8x16xf32>
    %c0_28 = arith.constant 0 : index
    %c0_29 = arith.constant 0 : index
    %50 = vector.load %arg9[%c0_28, %c0_29] : memref<32x512xf32, #tpu.memory_space<vmem>>, vector<32x512xf32>
    %cst_30 = arith.constant dense<0.000000e+00> : vector<8x512xf32>
    %51 = tpu.matmul %48, %50, %cst_30 {dimension_numbers = #tpu.dot_dimension_numbers<[1], [0], [0], [1], [0, 0, 1, 1], [], []>} : vector<8x32xf32>, vector<32x512xf32>, vector<8x512xf32> -> vector<8x512xf32>
    %c0_31 = arith.constant 0 : index
    %c0_32 = arith.constant 0 : index
    %52 = vector.load %arg10[%c0_31, %c0_32] : memref<1x512xf32, #tpu.memory_space<vmem>>, vector<1x512xf32>
    %53 = vector.broadcast %52 : vector<1x512xf32> to vector<8x512xf32>
    %54 = arith.addf %51, %53 : vector<8x512xf32>
    %55 = math.tanh %54 : vector<8x512xf32>
    %c0_33 = arith.constant 0 : index
    %c0_34 = arith.constant 0 : index
    %56 = vector.load %arg14[%c0_33, %c0_34] : memref<8x512xf32, #tpu.memory_space<vmem>>, vector<8x512xf32>
    tpu.vector_store %arg14[%c0_33, %c0_34], %55 {strides = array<i32>} : memref<8x512xf32, #tpu.memory_space<vmem>>, vector<8x512xf32>,
    %c0_35 = arith.constant 0 : index
    %c0_36 = arith.constant 0 : index
    %57 = vector.load %arg11[%c0_35, %c0_36] : memref<1x16xf32, #tpu.memory_space<vmem>>, vector<1x16xf32>
    %58 = vector.broadcast %57 : vector<1x16xf32> to vector<8x16xf32>
    %59 = arith.mulf %49, %58 : vector<8x16xf32>
    %cst_37 = arith.constant dense<0.000000e+00> : vector<8xf32>
    %60 = vector.multi_reduction <add>, %59, %cst_37 [1] : vector<8x16xf32> to vector<8xf32>
    %61 = vector.shape_cast %60 : vector<8xf32> to vector<8x1xf32>
    %c0_38 = arith.constant 0 : index
    %c0_39 = arith.constant 0 : index
    %62 = vector.load %arg12[%c0_38, %c0_39] : memref<1x1xf32, #tpu.memory_space<vmem>>, vector<1x1xf32>
    %63 = vector.broadcast %62 : vector<1x1xf32> to vector<8x1xf32>
    %64 = arith.addf %61, %63 : vector<8x1xf32>
    %65 = arith.negf %64 : vector<8x1xf32>
    %66 = math.exp %65 : vector<8x1xf32>
    %cst_40 = arith.constant 1.000000e+00 : f32
    %67 = vector.broadcast %cst_40 : f32 to vector<8x1xf32>
    %68 = arith.addf %67, %66 : vector<8x1xf32>
    %69 = arith.divf %67, %68 : vector<8x1xf32>
    %70 = vector.shape_cast %69 : vector<8x1xf32> to vector<8x1xf32>
    %71 = vector.broadcast %70 : vector<8x1xf32> to vector<8x128xf32>
    %c0_41 = arith.constant 0 : index
    %c0_42 = arith.constant 0 : index
    %72 = vector.load %arg15[%c0_41, %c0_42] : memref<8x128xf32, #tpu.memory_space<vmem>>, vector<8x128xf32>
    tpu.vector_store %arg15[%c0_41, %c0_42], %71 {strides = array<i32>} : memref<8x128xf32, #tpu.memory_space<vmem>>, vector<8x128xf32>,
    return
  }
}

</mosaic_0001>

<bundles_post_ra>
// kernel: explainable_ai_forward.1
= control target key start
LH: loop header
LB: loop body
LE: loop exit
PB: predicated region body
PF: predicated region fallthrough
CT: control target
= control target key end

     0   :  { %s711_s0 = inlined_call_operand.vmem [shape: f32[2,8,32], index: 0, kind: input, shape index: {}]   ;;  %s712_s1 = inlined_call_operand.vmem [shape: f32[8,16], index: 1, kind: input, shape index: {}]   ;;  %s713_s2 = inlined_call_operand.vmem [shape: f32[32,32], index: 2, kind: input, shape index: {}]   ;;  %s714_s3 = inlined_call_operand.vmem [shape: f32[1,32], index: 3, kind: input, shape index: {}]   ;;  %s715_s4 = inlined_call_operand.vmem [shape: f32[32,32], index: 4, kind: input, shape index: {}]   ;;  %s716_s5 = inlined_call_operand.vmem [shape: f32[1,32], index: 5, kind: input, shape index: {}]   ;;  %s717_s6 = inlined_call_operand.vmem [shape: f32[32,48], index: 6, kind: input, shape index: {}]   ;;  %s718_s7 = inlined_call_operand.vmem [shape: f32[16,48], index: 7, kind: input, shape index: {}]   ;;  %s719_s8 = inlined_call_operand.vmem [shape: f32[1,48], index: 8, kind: input, shape index: {}]   ;;  %s720_s9 = inlined_call_operand.vmem [shape: f32[32,512], index: 9, kind: input, shape index: {}]   ;;  %s721_s10 = inlined_call_operand.vmem [shape: f32[1,512], index: 10, kind: input, shape index: {}]   ;;  %s722_s11 = inlined_call_operand.vmem [shape: f32[1,16], index: 11, kind: input, shape index: {}]   ;;  %s723_s12 = inlined_call_operand.<no memory space> [shape: f32[1,1], index: 12, kind: input, shape index: {}]   ;;  %s724_s13 = inlined_call_operand.hbm [shape: f32[2,32], index: 13, kind: output, shape index: {0}]   ;;  %s725_s14 = inlined_call_operand.vmem [shape: f32[8,512], index: 14, kind: output, shape index: {1}]   ;;  %s726_s15 = inlined_call_operand.vmem [shape: f32[8,128], index: 15, kind: output, shape index: {2}]  }
   0x1   :  { %v21_v0 = vstv %s723_s12 }
   0x2   :  { %22 = vst [vmem:[#allocation2] sm:$0x1] %v21_v0 }
   0x3   :  { %v136_v1 = vld [vmem:[%s717_s6 + $0x18] sm:$0xff]  ;;  %v135_v2 = vld [vmem:[%s717_s6 + $0x10] sm:$0xff]  ;;  %v134_v3 = vld [vmem:[%s717_s6 + $0x8] sm:$0xff]  ;;  %vm63_vm0 = vcmask 1041409  }
   0x4   :  { %153 = vmatpush.msra.mxu2 %v136_v1  ;;  %v51_v4 = vld [vmem:[%s711_s0 + $0xf] sm:$0x1]  ;;  %v50_v5 = vld [vmem:[%s711_s0 + $0x7] sm:$0x1] }
   0x5   :  { %v62_v6 = vrot.slane %v51_v4, 7  ;;  %v133_v7 = vld [vmem:[%s717_s6] sm:$0xff] }
   0x6   :  { %154 = vmatpush.msra.mxu2 %v135_v2 }
   0x7   :  { %23 = vsyncpa [#allocation4], 0  ;;  %v64_v8 = vsel %vm63_vm0, %v62_v6, %v50_v5  ;;  %vm65_vm1 = vcmask 261120   ;;  %v55_v9 = vld [vmem:[%s713_s2 + $0x18] sm:$0xff]  ;;  %v54_v10 = vld [vmem:[%s713_s2 + $0x10] sm:$0xff]  ;;  %v164_v13 = vlaneseq  ;;  %s479_s26 = smov 32  }
   0x8   :  { %155 = vmatpush.msra.mxu2 %v134_v3  ;;  %80 = vmatpush.msra.mxu0 %v55_v9  ;;  %v53_v11 = vld [vmem:[%s713_s2 + $0x8] sm:$0xff]  ;;  %v52_v12 = vld [vmem:[%s713_s2] sm:$0xff]  ;;  %v92_v15 = vld [vmem:[%s715_s4 + $0x18] sm:$0xff]  ;;  %vm179_vm5 = vcmask 1041408   ;;  %v480_v23 = vmov 0.0   ;;  %vm175_vm6 = vcmask 15360  }
   0x9   :  { %v433_v14 = vld [vmem:[%s722_s11] ss:$0 sm:$0xff]  ;;  %112 = vmatpush.msra.mxu1 %v92_v15  ;;  %v167_v16 = vand.u32 127, %v164_v13  ;;  %v165_v18 = vshrl.u32 %v164_v13, 7  ;;  %v163_v25 = vld [vmem:[%s718_s7 + $0x8] sm:$0xff]  ;;  %vm203_vm7 = vcmask 130048  }
   0xa   :  { %156 = vmatpush.msra.mxu2 %v133_v7  ;;  %81 = vmatpush.msra.mxu0 %v54_v10  ;;  %v432_v20 = vld [vmem:[%s719_s8] ss:$0 sm:$0xff]  ;;  %v91_v28 = vld [vmem:[%s715_s4 + $0x10] sm:$0xff]  ;;  %v90_v31 = vld [vmem:[%s715_s4 + $0x8] sm:$0xff]  ;;  %vm120_vm8 = vcmask 254976   ;;  %s396_s18 = sshll.u32 %s724_s13, 4  ;;  %s397_s18 = int_to_ptr.hbm [resolvable:$true] %s396_s18 }
   0xb   :  { %415 = vmatmul.msk.f32.vlgmr.msra.gmra.mxu2 %vm65_vm1, %v64_v8  ;;  %348 = vrot.lane.b32.xlu0 %v433_v14, %s479_s26  ;;  %v168_v17 = vmul.u32 4, %v167_v16  ;;  %v162_v26 = vld [vmem:[%s718_s7] sm:$0xff]  ;;  %v241_v35 = vld [vmem:[%s720_s9 + $0x68] sm:$0xff]  ;;  %v242_v36 = vld [vmem:[%s720_s9 + $0x70] sm:$0xff]  ;;  %s481_s26 = smov 96   ;;  %v482_v16 = vmov 0  }
   0xc   :  { %82 = vmatpush.msra.mxu0 %v53_v11  ;;  %v161_v27 = vld [vmem:[%s712_s1] sm:$0xff]  ;;  %113 = vmatpush.msra.mxu1 %v91_v28  ;;  %v243_v37 = vld [vmem:[%s720_s9 + $0x78] sm:$0xff]  ;;  %v237_v40 = vld [vmem:[%s720_s9 + $0x48] sm:$0xff] }
   0xd   :  { %v170_v19 = vadd.s32 4, %v168_v17  ;;  %vm169_vm2 = vcmp.ge.s32.totalorder %v165_v18, %v168_v17  ;;  %v434_v29 = vld [vmem:[%s714_s3] ss:$0 sm:$0xff]  ;;  %309 = vmatpush.msrb.mxu2 %v242_v36  ;;  %v238_v41 = vld [vmem:[%s720_s9 + $0x50] sm:$0xff]  ;;  %v239_v42 = vld [vmem:[%s720_s9 + $0x58] sm:$0xff]  ;;  %430 = vset.pattern.permute.xlu2 %v482_v16 }
   0xe   :  { %83 = vmatpush.msra.mxu0 %v52_v12  ;;  %v89_v32 = vld [vmem:[%s715_s4] sm:$0xff]  ;;  %114 = vmatpush.msra.mxu1 %v90_v31  ;;  %v233_v44 = vld [vmem:[%s720_s9 + $0x28] sm:$0xff]  ;;  %v234_v45 = vld [vmem:[%s720_s9 + $0x30] sm:$0xff] }
   0xf   :  { %413 = vmatmul.msk.f32.vlgmr.msra.gmra.mxu0 %vm65_vm1, %v64_v8  ;;  %vm171_vm3 = vcmp.lt.s32.totalorder %v165_v18, %v170_v19  ;;  %v240_v33 = vld [vmem:[%s720_s9 + $0x60] sm:$0xff]  ;;  %310 = vmatpush.msrb.mxu2 %v238_v41  ;;  %v235_v46 = vld [vmem:[%s720_s9 + $0x38] sm:$0xff]  ;;  %v229_v48 = vld [vmem:[%s720_s9 + $0x8] sm:$0xff] }
  0x10   :  { %vm172_vm4 = vmand %vm169_vm2, %vm171_vm3  ;;  %269 = vmatpush.msrb.mxu0 %v240_v33  ;;  %115 = vmatpush.msra.mxu1 %v89_v32  ;;  %v236_v39 = vld [vmem:[%s720_s9 + $0x40] sm:$0xff]  ;;  %v230_v49 = vld [vmem:[%s720_s9 + $0x10] sm:$0xff] }
  0x11   :  { %v416_v24 = vsel %vm172_vm4, 1.0, %v480_v23  ;;  %v232_v43 = vld [vmem:[%s720_s9 + $0x20] sm:$0xff]  ;;  %311 = vmatpush.msrb.mxu2 %v234_v45  ;;  %v231_v50 = vld [vmem:[%s720_s9 + $0x18] sm:$0xff]  ;;  %431 = vset.pattern.permute.xlu0 %v482_v16 }
  0x12   :  { %289 = vmatpush.msrb.mxu1 %v241_v35  ;;  %270 = vmatpush.msrb.mxu0 %v236_v39  ;;  %v228_v47 = vld [vmem:[%s720_s9] sm:$0xff] }
  0x13   :  { %312 = vmatpush.msrb.mxu2 %v230_v49  ;;  %v435_v57 = vld [vmem:[%s716_s5] ss:$0 sm:$0xff] }
  0x14   :  { %290 = vmatpush.msrb.mxu1 %v237_v40  ;;  %271 = vmatpush.msrb.mxu0 %v232_v43  ;;  %v244_v62 = vld [vmem:[%s721_s10] sm:$0xf] }
  0x15   :  { %v246_v63 = vperm.slane %v244_v62, 0  ;;  %v247_v0 = vperm.slane %v244_v62, 1  ;;  %v248_v6 = vperm.slane %v244_v62, 2  ;;  %v249_v7 = vperm.slane %v244_v62, 3  ;;  %v436_v17 = vld [vmem:[#allocation2] ss:$0 sm:$0xff] }
  0x16   :  { %291 = vmatpush.msrb.mxu1 %v233_v44  ;;  %272 = vmatpush.msrb.mxu0 %v228_v47 }
  0x18   :  { %292 = vmatpush.msrb.mxu1 %v229_v48 }
  0x7d   :  { %v349_v54 = vpop.permute.xlu0 %348 }
  0x8c   :  { %v85_v30 = vpop.f32.mrf.mxu0 }
  0x8d   :  { %v86_v34 = vadd.f32 %v434_v29, %v85_v30 }
  0x8e   :  { %v158_v21 = vpop.f32.mrf.mxu2 }
  0x8f   :  { %v159_v22 = vadd.f32 %v432_v20, %v158_v21  ;;  %v88_v38 = vmax.f32 %v86_v34, 0.0 }
  0x91   :  { %417 = vmatpush.msk.msra.mxu3 %vm179_vm5, %v159_v22  ;;  %414 = vmatmul.msk.f32.vlgmr.msra.gmra.mxu1 %vm65_vm1, %v88_v38 }
  0x92   :  { %418 = vmatmul.msk.f32.vlgmr.msra.gmra.mxu3 %vm175_vm6, %v416_v24 }
  0x93   :  { %221 = vmatpush.msrb.mxu3 %v163_v25 }
  0x95   :  { %222 = vmatpush.msrb.mxu3 %v162_v26 }
  0x97   :  { %329 = vmatpush.msra.mxu3 %v243_v37 }
  0x99   :  { %330 = vmatpush.msra.mxu3 %v239_v42 }
  0x9a   :  { %419 = vmatmul.msk.f32.vlgmr.msrb.gmra.mxu3 %vm203_vm7, %v161_v27 }
  0x9b   :  { %331 = vmatpush.msra.mxu3 %v235_v46 }
  0x9d   :  { %332 = vmatpush.msra.mxu3 %v231_v50 }
 0x10e   :  { %v117_v58 = vpop.f32.mrf.mxu1 }
 0x10f   :  { %v118_v61 = vadd.f32 %v435_v57, %v117_v58 }
 0x111   :  { %v121_v1 = vsel %vm120_vm8, %v118_v61, -inf }
 0x115   :  { %v200_v51 = vpop.f32.mrf.mxu3 }
 0x11d   :  { %v224_v52 = vpop.f32.mrf.mxu3 }
 0x11e   :  { %v225_v53 = vadd.f32 %v224_v52, %v200_v51 }
 0x120   :  { %v227_v55 = vmax.f32 %v225_v53, 0.0 }
 0x122   :  { %v351_v56 = vmul.f32 %v349_v54, %v227_v55  ;;  %420 = vmatmul.msk.f32.vlgmr.msrb.gmra.mxu0 %vm65_vm1, %v227_v55  ;;  %421 = vmatmul.msk.f32.vlgmr.msrb.gmra.mxu1 %vm65_vm1, %v227_v55 }
 0x123   :  { %422 = vmatmul.msk.f32.vlgmr.msrb.gmra.mxu2 %vm65_vm1, %v227_v55  ;;  %423 = vmatmul.msk.f32.vlgmr.msra.gmra.mxu3 %vm65_vm1, %v227_v55 }
 0x124   :  { %353 = vrot.lane.b32.xlu0 %v351_v56, %s481_s26 }
 0x196   :  { %v354_v59 = vpop.permute.xlu0 %353 }
 0x197   :  { %v356_v60 = vsel %vm203_vm7, %v354_v59, 0.0 }
 0x198   :  { %357 = vadd.xlane.f32.xlu1 %v356_v60 }
 0x19f   :  { %v274_v2 = vpop.f32.mrf.mxu0  ;;  %v294_v3 = vpop.f32.mrf.mxu1 }
 0x1a0   :  { %v275_v4 = vadd.f32 %v274_v2, %v246_v63  ;;  %v295_v5 = vadd.f32 %v294_v3, %v247_v0  ;;  %122 = vmax.xlane.f32.xlu1 %v121_v1 }
 0x1a2   :  { %437 = vtanh.f32 %v275_v4 }
 0x1a3   :  { %439 = vtanh.f32 %v295_v5 }
 0x1a6   :  { %v314_v8 = vpop.f32.mrf.mxu2  ;;  %v334_v9 = vpop.f32.mrf.mxu3 }
 0x1a7   :  { %v315_v10 = vadd.f32 %v314_v8, %v248_v6  ;;  %v335_v11 = vadd.f32 %v334_v9, %v249_v7 }
 0x1a8   :  { %v438_v12 = vpop.eup %437 }
 0x1a9   :  { %v440_v13 = vpop.eup %439  ;;  %341 = vst [vmem:[%s725_s14] sm:$0xff] %v438_v12  ;;  %441 = vtanh.f32 %v315_v10 }
 0x1aa   :  { %342 = vst [vmem:[%s725_s14 + $0x8] sm:$0xff] %v440_v13  ;;  %443 = vtanh.f32 %v335_v11 }
 0x1af   :  { %v442_v14 = vpop.eup %441 }
 0x1b0   :  { %v444_v15 = vpop.eup %443  ;;  %343 = vst [vmem:[%s725_s14 + $0x10] sm:$0xff] %v442_v14 }
 0x1b1   :  { %344 = vst [vmem:[%s725_s14 + $0x18] sm:$0xff] %v444_v15  ;;  %s483_s14 = smov [#allocation3]  }
 0x1b2   :  { %s394_s16 = sshll.u32 %s483_s14, 4  ;;  %s395_s16 = int_to_ptr.vmem [resolvable:$true] %s394_s16 }
 0x20b   :  { %v358_v18 = vpop.xlane.xlu1 %357 }
 0x20c   :  { %v363_v19 = vadd.f32 %v436_v17, %v358_v18 }
 0x20e   :  { %v424_v20 = vmul.f32 -1.442695, %v363_v19 }
 0x210   :  { %445 = vpow2.f32 %v424_v20 }
 0x213   :  { %v123_v21 = vpop.xlane.xlu1 %122 }
 0x214   :  { %v124_v22 = vsub.f32 %v118_v61, %v123_v21 }
 0x216   :  { %v446_v23 = vpop.eup %445  ;;  %v125_v24 = vmul.f32 1.442695, %v124_v22 }
 0x217   :  { %v367_v25 = vadd.f32 1.0, %v446_v23 }
 0x218   :  { %447 = vpow2.f32 %v125_v24 }
 0x219   :  { %449 = vrcp.f32 %v367_v25  ;;  %v379_v33 = vand.u32 2147483648, %v367_v25  ;;  %vm373_vm10 = vweird.f32 %v367_v25  ;;  %v377_v34 = vand.u32 2147483647, %v367_v25 }
 0x21b   :  { %v380_v36 = vor.u32 1.1754944e-38, %v379_v33  ;;  %vm378_vm12 = vcmp.eq.f32.partialorder %v377_v34, 8.507059e+37 }
 0x21e   :  { %v448_v26 = vpop.eup %447 }
 0x21f   :  { %v127_v27 = vsel %vm120_vm8, %v448_v26, 0.0  ;;  %v450_v28 = vpop.eup %449 }
 0x220   :  { %128 = vadd.xlane.f32.xlu2 %v127_v27  ;;  %v369_v29 = vmul.f32 %v450_v28, %v367_v25  ;;  %vm374_vm9 = vweird.f32 %v450_v28 }
 0x221   :  { %vm375_vm11 = vmor %vm373_vm10, %vm374_vm9 }
 0x222   :  { %v370_v30 = vsub.f32 1.0, %v369_v29 }
 0x224   :  { %v371_v31 = vmul.f32 %v450_v28, %v370_v30 }
 0x226   :  { %v372_v32 = vadd.f32 %v450_v28, %v371_v31 }
 0x228   :  { %v376_v35 = vsel %vm375_vm11, %v450_v28, %v372_v32 }
 0x229   :  { %v381_v37 = vsel %vm378_vm12, %v380_v36, %v376_v35 }
 0x238   :  { %385 = vperm.xlu2 %430, %v381_v37  }
 0x293   :  { %v129_v38 = vpop.xlane.xlu2 %128 }
 0x294   :  { %451 = vrcp.f32 %v129_v38 }
 0x29a   :  { %v452_v39 = vpop.eup %451 }
 0x29b   :  { %v386_v40 = vpop.permute.xlu2 %385  ;;  %v131_v41 = vmul.f32 %v452_v39, %v448_v26 }
 0x29c   :  { %388 = vst [vmem:[%s726_s15] sm:$0xff] %v386_v40 }
 0x29d   :  { %132 = vst.msk [vmem:[#allocation3] sm:$0x3] %vm120_vm8, %v131_v41 }
 0x29e   :  { %399 = dma.vmem_to_hbm [thread:$0]  %s395_s16, 32, %s397_s18, [#allocation4]  }
 0x29f   :  { %477 = dma.done.wait [#allocation4], 32  }
 0x2a0   :  { %478 = vsyncadd [#allocation4], 4294967264 }
 0x2a1   :  { %412 = vsyncpa [#allocation4], 1 }

</bundles_post_ra>
